<compile_context>
chip_gen: v5e
topology: v5e:2x2
jax: 0.10.0
libtpu: 0.0.40
codegen_flags: <defaults>
</compile_context>

<pallas_src>
import functools

import jax
import jax.numpy as jnp
from jax.experimental import pallas as pl
from jax.experimental.pallas import tpu as pltpu

# ----------------------------- config (small, synthetic) -----------------------------
IN_SR = 44100                # == model sr -> no resampling
FRAME_SIZE = 128             # F (lane-dense: fills 128-lane vregs / MXU K)
N_FRAMES = 8                 # T
N_MODEL = FRAME_SIZE * N_FRAMES   # model_n_samples = 1024
EMB_DIM = 128                # D (lane-dense projection output)
P_NORM = 2                   # vector L2 norm (use_time_varying=False path)
MAX_BATCHES_PER_BLOCK = 16   # 2 * 16 * 8 = 256 matmul rows per grid step


# ----------------------------- Pallas kernel -----------------------------
def _embedding_loss_kernel(rows_ref, w_ref, b_ref, out_ref):
    """One grid step = one block of BB batches.

    rows_ref : (2*BB*T, F) bf16  frames: x rows of the block first, then x_target rows
    w_ref    : (F, D)      bf16  embedding projection weight
    b_ref    : (1, D)      f32   embedding projection bias
    out_ref  : (BB, 128)   f32   per-batch L2 distance, broadcast across 128 lanes
    """
    rb = rows_ref.shape[0]
    bb = out_ref.shape[0]
    d = w_ref.shape[1]
    t = rb // (2 * bb)

    # get_embedding: ONE fused MXU matmul for x AND x_target of all BB batches.
    z = jnp.dot(rows_ref[...], w_ref[...], preferred_element_type=jnp.float32)
    emb = jnp.tanh(z + b_ref[...])                       # (2*BB*T, D), f32 epilogue

    # use_time_varying=False: mean over the time (frame) axis.
    # Sum over T, then fold the 1/T into a single scale on the difference.
    s = jnp.sum(emb.reshape(2, bb, t, d), axis=2)        # (2, BB, D)
    diff = (s[1] - s[0]) * jnp.float32(1.0 / t)          # (BB, D): emb_target - emb

    # p=2 vector norm per batch element.
    dist = jnp.sqrt(jnp.sum(diff * diff, axis=-1, keepdims=True))   # (BB, 1)

    # Lane-dense, unmasked store; the wrapper reads lane 0.
    out_ref[...] = jnp.broadcast_to(dist, out_ref.shape)


def _embedding_loss_pallas(rows, weight, bias, b_pad, bb):
    """rows: (B_pad*2*T, F) bf16; weight: (F, D) bf16; bias: (1, D) f32."""
    g = b_pad // bb
    rb = rows.shape[0] // g          # rows per grid block = 2 * BB * T
    f = rows.shape[1]
    d = weight.shape[1]

    out = pl.pallas_call(
        _embedding_loss_kernel,
        out_shape=jax.ShapeDtypeStruct((b_pad, 128), jnp.float32),
        grid_spec=pltpu.PrefetchScalarGridSpec(
            num_scalar_prefetch=0,
            grid=(g,),
            in_specs=[
                pl.BlockSpec((rb, f), lambda i: (i, 0)),   # frame slab for this block
                pl.BlockSpec((f, d), lambda i: (0, 0)),    # weight (resident)
                pl.BlockSpec((1, d), lambda i: (0, 0)),    # bias (resident)
            ],
            out_specs=pl.BlockSpec((bb, 128), lambda i: (i, 0)),
        ),
        compiler_params=pltpu.CompilerParams(
            # Each grid step writes a distinct output block -> safe to parallelize
            # across TensorCores (2 TCs on v7x; no-op on v5e/v6e).
            dimension_semantics=("parallel",),
        ),
    )(rows, weight, bias)
    return out


# ----------------------------- glue (preproc / framing / final mean) -----------------------------
def preproc_audio(x, model_n_samples):
    """Matches EmbeddingLoss.preproc_audio (no-resampler branch). x: (B, N)."""
    n = x.shape[-1]
    if n < model_n_samples:
        n_repeats = model_n_samples // n + 1
        x = jnp.tile(x, (1, n_repeats))
    return x[:, :model_n_samples]


@functools.partial(jax.jit, static_argnames=())
def embedding_loss_forward(x, x_target, weight, bias):
    """x, x_target: (B, 1, N) float32 -> scalar loss."""
    assert x.ndim == 3 and x_target.ndim == 3
    assert x.shape[1] == 1 and x_target.shape[1] == 1
    x = jnp.squeeze(x, axis=1)
    x_target = jnp.squeeze(x_target, axis=1)
    x = preproc_audio(x, N_MODEL)
    x_target = preproc_audio(x_target, N_MODEL)

    b = x.shape[0]
    bb = min(MAX_BATCHES_PER_BLOCK, b)   # batches per grid block
    g = -(-b // bb)                      # ceil div
    b_pad = g * bb

    xf = x.reshape(b, N_FRAMES, FRAME_SIZE)
    xtf = x_target.reshape(b, N_FRAMES, FRAME_SIZE)
    if b_pad != b:
        pad = ((0, b_pad - b), (0, 0), (0, 0))
        xf = jnp.pad(xf, pad)
        xtf = jnp.pad(xtf, pad)

    # Per grid block: BB*T rows of x, then BB*T rows of x_target -> flat 2-D row slab.
    stacked = jnp.stack(
        [xf.reshape(g, bb, N_FRAMES, FRAME_SIZE),
         xtf.reshape(g, bb, N_FRAMES, FRAME_SIZE)],
        axis=1)                                            # (G, 2, BB, T, F)
    rows = stacked.reshape(b_pad * 2 * N_FRAMES, FRAME_SIZE).astype(jnp.bfloat16)

    dists = _embedding_loss_pallas(rows, weight.astype(jnp.bfloat16), bias, b_pad, bb)
    # Final batch mean in the wrapper (padded batches sliced off).
    return jnp.mean(dists[:b, 0])


# ----------------------------- pure-JAX f32 reference -----------------------------
def _reference(x, x_target, weight, bias):
    x = jnp.squeeze(x, axis=1)
    x_target = jnp.squeeze(x_target, axis=1)
    x = preproc_audio(x, N_MODEL)
    x_target = preproc_audio(x_target, N_MODEL)
    b = x.shape[0]
    xf = x.reshape(b, N_FRAMES, FRAME_SIZE)
    xtf = x_target.reshape(b, N_FRAMES, FRAME_SIZE)
    emb = jnp.tanh(jnp.einsum("btf,fd->btd", xf, weight) + bias[None])
    emb_t = jnp.tanh(jnp.einsum("btf,fd->btd", xtf, weight) + bias[None])
    m = emb.mean(axis=1)
    m_t = emb_t.mean(axis=1)
    diff = m_t - m
    return jnp.mean(jnp.sqrt(jnp.sum(diff * diff, axis=-1)))


# ----------------------------- main -----------------------------
if __name__ == "__main__":
    key = jax.random.PRNGKey(0)
    k_x, k_xt, k_w, k_b = jax.random.split(key, 4)

    B = 2
    N_IN = 600  # < N_MODEL -> exercises the repeat-then-crop preproc branch

    x = jax.random.normal(k_x, (B, 1, N_IN), dtype=jnp.float32)
    x_target = jax.random.normal(k_xt, (B, 1, N_IN), dtype=jnp.float32)

    # Deterministic synthetic embedding parameters.
    weight = jax.random.normal(k_w, (FRAME_SIZE, EMB_DIM), dtype=jnp.float32) * 0.1
    bias = jax.random.normal(k_b, (1, EMB_DIM), dtype=jnp.float32) * 0.01

    loss = jax.block_until_ready(embedding_loss_forward(x, x_target, weight, bias))
    ref = jax.block_until_ready(_reference(x, x_target, weight, bias))

    # Kernel uses bf16 matmul inputs with f32 accumulation/epilogue; tolerance is
    # loosened accordingly vs the pure-f32 reference.
    assert jnp.allclose(loss, ref, rtol=2e-2, atol=2e-2), (loss, ref)

    print("KERNEL_OK")
</pallas_src>

<mosaic_0001>
module attributes {stable_mosaic.version = 11 : i64} {
  func.func @_embedding_loss_kernel(%arg0: i32, %arg1: memref<32x128xbf16, #tpu.memory_space<vmem>>, %arg2: memref<128x128xbf16, #tpu.memory_space<vmem>>, %arg3: memref<1x128xf32, #tpu.memory_space<vmem>>, %arg4: memref<2x128xf32, #tpu.memory_space<vmem>>) attributes {dimension_semantics = [#tpu.dimension_semantics<parallel>], iteration_bounds = array<i64: 1>, scalar_prefetch = 0 : i64, scratch_operands = 0 : i64, tpu.core_type = #tpu.core_type<tc>, window_params = [{transform_indices = @transform_0, window_bounds = array<i64: 32, 128>}, {pipeline_mode = #tpu.pipeline_mode<synchronous>, transform_indices = @transform_1, window_bounds = array<i64: 128, 128>}, {pipeline_mode = #tpu.pipeline_mode<synchronous>, transform_indices = @transform_2, window_bounds = array<i64: 1, 128>}, {transform_indices = @transform_3, window_bounds = array<i64: 2, 128>}]} {
    %c0 = arith.constant 0 : index
    %c0_0 = arith.constant 0 : index
    %0 = vector.load %arg1[%c0, %c0_0] : memref<32x128xbf16, #tpu.memory_space<vmem>>, vector<32x128xbf16>
    %c0_1 = arith.constant 0 : index
    %c0_2 = arith.constant 0 : index
    %1 = vector.load %arg2[%c0_1, %c0_2] : memref<128x128xbf16, #tpu.memory_space<vmem>>, vector<128x128xbf16>
    %cst = arith.constant dense<0.000000e+00> : vector<32x128xf32>
    %2 = tpu.matmul %0, %1, %cst {dimension_numbers = #tpu.dot_dimension_numbers<[1], [0], [0], [1], [0, 0, 1, 1], [], []>} : vector<32x128xbf16>, vector<128x128xbf16>, vector<32x128xf32> -> vector<32x128xf32>
    %c0_3 = arith.constant 0 : index
    %c0_4 = arith.constant 0 : index
    %3 = vector.load %arg3[%c0_3, %c0_4] : memref<1x128xf32, #tpu.memory_space<vmem>>, vector<1x128xf32>
    %4 = vector.broadcast %3 : vector<1x128xf32> to vector<32x128xf32>
    %5 = arith.addf %2, %4 : vector<32x128xf32>
    %6 = math.tanh %5 : vector<32x128xf32>
    %7 = vector.shape_cast %6 : vector<32x128xf32> to vector<2x2x8x128xf32>
    %cst_5 = arith.constant dense<0.000000e+00> : vector<2x2x128xf32>
    %8 = vector.multi_reduction <add>, %7, %cst_5 [2] : vector<2x2x8x128xf32> to vector<2x2x128xf32>
    %9 = vector.extract_strided_slice %8 {offsets = [1, 0, 0], sizes = [1, 2, 128], strides = [1, 1, 1]} : vector<2x2x128xf32> to vector<1x2x128xf32>
    %10 = vector.shape_cast %9 : vector<1x2x128xf32> to vector<2x128xf32>
    %11 = vector.extract_strided_slice %8 {offsets = [0, 0, 0], sizes = [1, 2, 128], strides = [1, 1, 1]} : vector<2x2x128xf32> to vector<1x2x128xf32>
    %12 = vector.shape_cast %11 : vector<1x2x128xf32> to vector<2x128xf32>
    %13 = arith.subf %10, %12 : vector<2x128xf32>
    %cst_6 = arith.constant 1.250000e-01 : f32
    %14 = vector.broadcast %cst_6 : f32 to vector<2x128xf32>
    %15 = arith.mulf %13, %14 : vector<2x128xf32>
    %16 = arith.mulf %15, %15 : vector<2x128xf32>
    %cst_7 = arith.constant dense<0.000000e+00> : vector<2xf32>
    %17 = vector.multi_reduction <add>, %16, %cst_7 [1] : vector<2x128xf32> to vector<2xf32>
    %18 = vector.shape_cast %17 : vector<2xf32> to vector<2x1xf32>
    %19 = math.sqrt %18 : vector<2x1xf32>
    %20 = vector.shape_cast %19 : vector<2x1xf32> to vector<2x1xf32>
    %21 = vector.broadcast %20 : vector<2x1xf32> to vector<2x128xf32>
    %c0_8 = arith.constant 0 : index
    %c0_9 = arith.constant 0 : index
    %22 = vector.load %arg4[%c0_8, %c0_9] : memref<2x128xf32, #tpu.memory_space<vmem>>, vector<2x128xf32>
    tpu.vector_store %arg4[%c0_8, %c0_9], %21 {strides = array<i32>} : memref<2x128xf32, #tpu.memory_space<vmem>>, vector<2x128xf32>,
    return
  }
  func.func @transform_0(%arg0: i32) -> (i32, i32) {
    %c0_i32 = arith.constant 0 : i32
    %c0_i32_0 = arith.constant 0 : i32
    return %arg0, %c0_i32 : i32, i32
  }
  func.func @transform_1(%arg0: i32) -> (i32, i32) {
    %c0_i32 = arith.constant 0 : i32
    %c0_i32_0 = arith.constant 0 : i32
    %c0_i32_1 = arith.constant 0 : i32
    return %c0_i32, %c0_i32_0 : i32, i32
  }
  func.func @transform_2(%arg0: i32) -> (i32, i32) {
    %c0_i32 = arith.constant 0 : i32
    %c0_i32_0 = arith.constant 0 : i32
    %c0_i32_1 = arith.constant 0 : i32
    return %c0_i32, %c0_i32_0 : i32, i32
  }
  func.func @transform_3(%arg0: i32) -> (i32, i32) {
    %c0_i32 = arith.constant 0 : i32
    %c0_i32_0 = arith.constant 0 : i32
    return %arg0, %c0_i32 : i32, i32
  }
}

</mosaic_0001>

<bundles_post_ra>
// kernel: tile.1
= control target key start
LH: loop header
LB: loop body
LE: loop exit
PB: predicated region body
PF: predicated region fallthrough
CT: control target
= control target key end

     0   :  { %s171_s26 = smov 12  ;;  %s181_s27 = smov 192  ;;  %vm173_vm0 = vcmask 1043458   ;;  %vm178_vm1 = vcmask 1045508   ;;  %vm183_vm2 = vcmask 1047558   ;;  %vm185_vm3 = vcmask 326656   ;;  %s416_s0 = inlined_call_operand.vmem [shape: bf16[2,2,600], index: 0, kind: input, shape index: {}]   ;;  %s417_s1 = inlined_call_operand.vmem [shape: bf16[2,1200], index: 1, kind: output, shape index: {}]  }
   0x1   :  { %v308_v0 = vld [vmem:[%s416_s0 + $0x9] sm:$0x1]  ;;  %v309_v1 = vld [vmem:[%s416_s0 + $0x8] sm:$0x1]  ;;  %v310_v2 = vld [vmem:[%s416_s0 + $0x7] sm:$0x1] }
   0x2   :  { %v15_v3 = vunpack.c.l.bf16 %v308_v0  ;;  %v30_v4 = vunpack.c.l.bf16 %v309_v1  ;;  %v45_v5 = vunpack.c.l.bf16 %v310_v2  ;;  %v311_v6 = vld [vmem:[%s416_s0 + $0x6] sm:$0x1]  ;;  %v312_v7 = vld [vmem:[%s416_s0 + $0x5] sm:$0x1]  ;;  %v313_v8 = vld [vmem:[%s416_s0 + $0x4] sm:$0x1] }
   0x3   :  { %v60_v9 = vunpack.c.l.bf16 %v311_v6  ;;  %v314_v10 = vld [vmem:[%s416_s0 + $0x3] sm:$0x1]  ;;  %v75_v11 = vunpack.c.l.bf16 %v312_v7  ;;  %v315_v12 = vld [vmem:[%s416_s0 + $0x2] sm:$0x1]  ;;  %v90_v13 = vunpack.c.l.bf16 %v313_v8  ;;  %v316_v14 = vld [vmem:[%s416_s0 + $0x1] sm:$0x1] }
   0x4   :  { %18 = vst [vmem:[#allocation1 + $0x48] sm:$0x3] %v15_v3  ;;  %v105_v15 = vunpack.c.l.bf16 %v314_v10  ;;  %v148_v16 = vld [vmem:[%s416_s0] sm:$0x1]  ;;  %v120_v17 = vunpack.c.l.bf16 %v315_v12  ;;  %v135_v18 = vunpack.c.l.bf16 %v316_v14  ;;  %s165_s0 = smov 3  ;;  %s202_s28 = smov 3 }
   0x5   :  { %33 = vst [vmem:[#allocation1 + $0x40] sm:$0x3] %v30_v4  ;;  %v149_v19 = vunpack.c.l.bf16 %v148_v16  ;;  %s176_s29 = smov 48  ;;  %s210_s30 = smov 48  ;;  %vm155_vm4 = vcmask 719872   ;;  %vm189_vm5 = vcmask 392192  }
   0x6   :  { %48 = vst [vmem:[#allocation1 + $0x38] sm:$0x3] %v45_v5  ;;  %s168_s2 = smov 3  ;;  %s205_s3 = smov 12  ;;  %vm192_vm6 = vcmask 1048256  }
   0x7   :  { %63 = vst [vmem:[#allocation1 + $0x30] sm:$0x3] %v60_v9  ;;  %s215_s4 = smov 192  ;;  %s220_s5 = smov 3 }
   0x8   :  { %78 = vst [vmem:[#allocation1 + $0x28] sm:$0x3] %v75_v11  ;;  %s327_s6 = smov 88   ;;  %s153_s15 = smov 3 }
   0x9   :  { %93 = vst [vmem:[#allocation1 + $0x20] sm:$0x3] %v90_v13 }
   0xa   :  { %108 = vst [vmem:[#allocation1 + $0x18] sm:$0x3] %v105_v15 }
   0xb   :  { %123 = vst [vmem:[#allocation1 + $0x10] sm:$0x3] %v120_v17 }
   0xc   :  { %138 = vst [vmem:[#allocation1 + $0x8] sm:$0x3] %v135_v18 }
   0xd   :  { %151 = vst [vmem:[#allocation1] sm:$0x3] %v149_v19 }
   0xf   :  { %v161_v20 = vld [vmem:[#allocation1 + $0x28] ss:$8 sm:$0xf]  }
  0x10   :  { %163 = vst [vmem:[#allocation0 + $0x1] ss:$8 sm:$0xf] %v161_v20   ;;  %v166_v23 = vld [vmem:[#allocation1 + $0x21] ss:$40 sm:%s165_s0]  }
  0x11   :  { %v182_v21 = vld [vmem:[#allocation1 - $0xd7] ss:$40 sm:%s181_s27]   ;;  %v154_v48 = vld [vmem:[#allocation1 + $0x20] ss:$40 sm:%s153_s15]  }
  0x12   :  { %v203_v22 = vld [vmem:[#allocation1 + $0x19] ss:$40 sm:%s202_s28]   ;;  %157 = vst.msk [vmem:[#allocation0 + $0x20] sm:$0x3] %vm155_vm4, %v154_v48  }
  0x13   :  { %v172_v24 = vld [vmem:[#allocation1 - $0x47] ss:$40 sm:%s171_s26]  }
  0x14   :  { %v177_v25 = vld [vmem:[#allocation1 - $0x8f] ss:$40 sm:%s176_s29]   ;;  %v158_v27 = vld [vmem:[#allocation1] ss:$8 sm:$0xf]  }
  0x15   :  { %v211_v26 = vld [vmem:[#allocation1 - $0x97] ss:$40 sm:%s210_s30]   ;;  %159 = vst [vmem:[#allocation0] ss:$8 sm:$0xf] %v158_v27  }
  0x16   :  { %v169_v28 = vld [vmem:[#allocation1 + $0x1] ss:$40 sm:%s168_s2]  }
  0x17   :  { %v174_v29 = vsel %vm173_vm0, %v172_v24, %v169_v28  ;;  %v206_v30 = vld [vmem:[#allocation1 - $0x4f] ss:$40 sm:%s205_s3]  }
  0x18   :  { %v179_v31 = vsel %vm178_vm1, %v177_v25, %v174_v29  ;;  %v208_v32 = vsel %vm173_vm0, %v206_v30, %v203_v22  ;;  %v216_v36 = vld [vmem:[#allocation1 - $0xdf] ss:$40 sm:%s215_s4]  }
  0x19   :  { %v184_v33 = vsel %vm183_vm2, %v182_v21, %v179_v31  ;;  %v213_v35 = vsel %vm178_vm1, %v211_v26, %v208_v32  ;;  %v221_v38 = vld [vmem:[#allocation1 + $0x21] ss:$40 sm:%s220_s5]  }
  0x1a   :  { %v186_v34 = vsel %vm185_vm3, %v184_v33, %v166_v23  ;;  %v218_v37 = vsel %vm183_vm2, %v216_v36, %v213_v35 }
  0x1b   :  { %187 = vrot.lane.b32.xlu0 %v186_v34, %s327_s6  ;;  %v223_v47 = vsel %vm185_vm3, %v221_v38, %v218_v37 }
  0x1c   :  { %v240_v39 = vld [vmem:[#allocation0] sm:$0x3]  ;;  %v246_v40 = vld [vmem:[#allocation0 + $0x8] sm:$0x3]  ;;  %v253_v41 = vld [vmem:[#allocation0 + $0x10] sm:$0x3] }
  0x1d   :  { %v241_v42 = vpack.c.bf16 0.0, %v240_v39  ;;  %v247_v43 = vpack.c.bf16 0.0, %v246_v40  ;;  %v254_v44 = vpack.c.bf16 0.0, %v253_v41  ;;  %v260_v45 = vld [vmem:[#allocation0 + $0x18] sm:$0x3] }
  0x1e   :  { %v261_v46 = vpack.c.bf16 0.0, %v260_v45 }
  0x1f   :  { %244 = vst [vmem:[%s417_s1] sm:$0x1] %v241_v42 }
  0x20   :  { %317 = vst [vmem:[%s417_s1 + $0x1] sm:$0x1] %v247_v43 }
  0x21   :  { %318 = vst [vmem:[%s417_s1 + $0x2] sm:$0x1] %v254_v44 }
  0x22   :  { %319 = vst [vmem:[%s417_s1 + $0x3] sm:$0x1] %v261_v46 }
  0x23   :  { %224 = vrot.lane.b32.xlu0 %v223_v47, %s327_s6 }
  0x8d   :  { %v188_v49 = vpop.permute.xlu0 %187  }
  0x8e   :  { %191 = vst.msk [vmem:[#allocation0 + $0x48] sm:$0x3] %vm189_vm5, %v188_v49  }
  0x8f   :  { %194 = vst.msk [vmem:[#allocation0 + $0x20] sm:$0x3] %vm192_vm6, %v188_v49  }
  0x90   :  { %196 = vst.msk [vmem:[#allocation0 + $0x26] sm:$0xc] %vm192_vm6, %v188_v49  }
  0x91   :  { %198 = vst.msk [vmem:[#allocation0 + $0x2c] sm:$0x30] %vm192_vm6, %v188_v49  }
  0x92   :  { %200 = vst.msk [vmem:[#allocation0 + $0x32] sm:$0xc0] %vm192_vm6, %v188_v49  }
  0x95   :  { %v302_v50 = vld [vmem:[#allocation0 + $0x48] sm:$0x3]  ;;  %v225_v51 = vpop.permute.xlu0 %224  }
  0x96   :  { %v267_v52 = vld [vmem:[#allocation0 + $0x20] sm:$0x3]  ;;  %v303_v53 = vpack.c.bf16 0.0, %v302_v50  ;;  %228 = vst.msk [vmem:[#allocation0 + $0x40] sm:$0x3] %vm155_vm4, %v225_v51  }
  0x97   :  { %v268_v54 = vpack.c.bf16 0.0, %v267_v52  ;;  %230 = vst.msk [vmem:[#allocation0 + $0x26] sm:$0xc] %vm155_vm4, %v225_v51  }
  0x98   :  { %325 = vst [vmem:[%s417_s1 + $0x9] sm:$0x1] %v303_v53 }
  0x99   :  { %320 = vst [vmem:[%s417_s1 + $0x4] sm:$0x1] %v268_v54 }
  0x9a   :  { %232 = vst.msk [vmem:[#allocation0 + $0x2c] sm:$0x30] %vm155_vm4, %v225_v51  }
  0x9b   :  { %234 = vst.msk [vmem:[#allocation0 + $0x32] sm:$0xc0] %vm155_vm4, %v225_v51  }
  0x9c   :  { %237 = vst.msk [vmem:[#allocation0 + $0x40] sm:$0x3] %vm192_vm6, %v225_v51  }
  0x9e   :  { %v274_v55 = vld [vmem:[#allocation0 + $0x28] sm:$0x3] }
  0x9f   :  { %v275_v56 = vpack.c.bf16 0.0, %v274_v55 }
  0xa1   :  { %321 = vst [vmem:[%s417_s1 + $0x5] sm:$0x1] %v275_v56  ;;  %v281_v57 = vld [vmem:[#allocation0 + $0x30] sm:$0x3] }
  0xa2   :  { %v282_v58 = vpack.c.bf16 0.0, %v281_v57  ;;  %v288_v59 = vld [vmem:[#allocation0 + $0x38] sm:$0x3] }
  0xa3   :  { %v289_v60 = vpack.c.bf16 0.0, %v288_v59  ;;  %v295_v61 = vld [vmem:[#allocation0 + $0x40] sm:$0x3] }
  0xa4   :  { %322 = vst [vmem:[%s417_s1 + $0x6] sm:$0x1] %v282_v58  ;;  %v296_v62 = vpack.c.bf16 0.0, %v295_v61 }
  0xa5   :  { %323 = vst [vmem:[%s417_s1 + $0x7] sm:$0x1] %v289_v60 }
  0xa6   :  { %324 = vst [vmem:[%s417_s1 + $0x8] sm:$0x1] %v296_v62 }

// kernel: embedding_loss_forward.1
= control target key start
LH: loop header
LB: loop body
LE: loop exit
PB: predicated region body
PF: predicated region fallthrough
CT: control target
= control target key end

     0   :  { %vm153_vm0 = vcmask 1041409   ;;  %vm156_vm1 = vcmask 1041408   ;;  %s302_s1 = inlined_call_operand.vmem [shape: bf16[128,128], index: 1, kind: input, shape index: {}]   ;;  %s303_s2 = inlined_call_operand.vmem [shape: f32[1,128], index: 2, kind: input, shape index: {}]   ;;  %s304_s0 = inlined_call_operand.vmem [shape: bf16[32,128], index: 0, kind: input, shape index: {}]   ;;  %s305_s3 = inlined_call_operand.vmem [shape: f32[2,128], index: 3, kind: output, shape index: {}]  }
   0x1   :  { %v226_v0 = vld [vmem:[%s302_s1 + $0x38] sm:$0xff]  ;;  %v225_v1 = vld [vmem:[%s302_s1 + $0x30] sm:$0xff]  ;;  %v224_v2 = vld [vmem:[%s302_s1 + $0x28] sm:$0xff] }
   0x2   :  { %98 = vmatpush.bf16.msra.mxu0 %v226_v0  ;;  %227 = vmatpush.bf16.msra.mxu1 %v226_v0  ;;  %v223_v3 = vld [vmem:[%s302_s1 + $0x20] sm:$0xff]  ;;  %v222_v4 = vld [vmem:[%s302_s1 + $0x18] sm:$0xff]  ;;  %v221_v5 = vld [vmem:[%s302_s1 + $0x10] sm:$0xff] }
   0x3   :  { %v220_v6 = vld [vmem:[%s302_s1 + $0x8] sm:$0xff]  ;;  %v219_v7 = vld [vmem:[%s302_s1] sm:$0xff] }
   0x4   :  { %v217_v8 = vld [vmem:[%s304_s0] sm:$0xff]  ;;  %v218_v9 = vld [vmem:[%s304_s0 + $0x8] sm:$0xff] }
   0x5   :  { %v235_v10 = vld [vmem:[%s303_s2] ss:$0 sm:$0xff] }
   0x6   :  { %99 = vmatpush.bf16.msra.mxu0 %v225_v1  ;;  %228 = vmatpush.bf16.msra.mxu1 %v225_v1 }
   0xa   :  { %100 = vmatpush.bf16.msra.mxu0 %v224_v2  ;;  %229 = vmatpush.bf16.msra.mxu1 %v224_v2 }
   0xe   :  { %101 = vmatpush.bf16.msra.mxu0 %v223_v3  ;;  %230 = vmatpush.bf16.msra.mxu1 %v223_v3 }
  0x12   :  { %102 = vmatpush.bf16.msra.mxu0 %v222_v4  ;;  %231 = vmatpush.bf16.msra.mxu1 %v222_v4 }
  0x16   :  { %103 = vmatpush.bf16.msra.mxu0 %v221_v5  ;;  %232 = vmatpush.bf16.msra.mxu1 %v221_v5 }
  0x1a   :  { %104 = vmatpush.bf16.msra.mxu0 %v220_v6  ;;  %233 = vmatpush.bf16.msra.mxu1 %v220_v6 }
  0x1e   :  { %105 = vmatpush.bf16.msra.mxu0 %v219_v7  ;;  %234 = vmatpush.bf16.msra.mxu1 %v219_v7 }
  0x21   :  { %106 = vmatmul.bf16.vlgmr.msra.gmra.mxu0 %v217_v8  ;;  %111 = vmatmul.bf16.vlgmr.msra.gmra.mxu1 %v218_v9 }
  0x9e   :  { %v107_v11 = vpop.f32.mrf.mxu0  ;;  %v112_v12 = vpop.f32.mrf.mxu1 }
  0x9f   :  { %v108_v13 = vadd.f32 %v235_v10, %v107_v11  ;;  %v113_v14 = vadd.f32 %v235_v10, %v112_v12 }
  0xa1   :  { %236 = vtanh.f32 %v108_v13 }
  0xa2   :  { %238 = vtanh.f32 %v113_v14 }
  0xa6   :  { %v109_v15 = vpop.f32.mrf.mxu0  ;;  %v114_v16 = vpop.f32.mrf.mxu1 }
  0xa7   :  { %v237_v17 = vpop.eup %236  ;;  %v110_v18 = vadd.f32 %v235_v10, %v109_v15  ;;  %v115_v19 = vadd.f32 %v235_v10, %v114_v16 }
  0xa8   :  { %v239_v20 = vpop.eup %238  ;;  %v121_v21 = vrot.slane %v237_v17, 4 }
  0xa9   :  { %v133_v22 = vrot.slane %v239_v20, 4  ;;  %240 = vtanh.f32 %v110_v18 }
  0xaa   :  { %v122_v23 = vadd.f32 %v237_v17, %v121_v21  ;;  %242 = vtanh.f32 %v115_v19 }
  0xab   :  { %v134_v24 = vadd.f32 %v239_v20, %v133_v22 }
  0xac   :  { %v123_v25 = vrot.slane %v122_v23, 2 }
  0xad   :  { %v135_v26 = vrot.slane %v134_v24, 2 }
  0xae   :  { %v124_v27 = vadd.f32 %v123_v25, %v122_v23 }
  0xaf   :  { %v241_v28 = vpop.eup %240  ;;  %v136_v29 = vadd.f32 %v135_v26, %v134_v24 }
  0xb0   :  { %v243_v30 = vpop.eup %242  ;;  %v127_v31 = vrot.slane %v241_v28, 4  ;;  %v125_v33 = vrot.slane %v124_v27, 1 }
  0xb1   :  { %v139_v32 = vrot.slane %v243_v30, 4  ;;  %v137_v34 = vrot.slane %v136_v29, 1 }
  0xb2   :  { %v128_v35 = vadd.f32 %v241_v28, %v127_v31  ;;  %v126_v39 = vadd.f32 %v125_v33, %v124_v27 }
  0xb3   :  { %v140_v36 = vadd.f32 %v243_v30, %v139_v32  ;;  %v138_v40 = vadd.f32 %v137_v34, %v136_v29 }
  0xb4   :  { %v129_v37 = vrot.slane %v128_v35, 2 }
  0xb5   :  { %v141_v38 = vrot.slane %v140_v36, 2  ;;  %v145_v45 = vsub.f32 %v138_v40, %v126_v39 }
  0xb6   :  { %v130_v41 = vadd.f32 %v129_v37, %v128_v35 }
  0xb7   :  { %v142_v42 = vadd.f32 %v141_v38, %v140_v36  ;;  %v147_v49 = vmul.f32 0.125, %v145_v45 }
  0xb8   :  { %v131_v43 = vrot.slane %v130_v41, 1 }
  0xb9   :  { %v143_v44 = vrot.slane %v142_v42, 1  ;;  %v149_v51 = vmul.f32 %v147_v49, %v147_v49 }
  0xba   :  { %v132_v46 = vadd.f32 %v131_v43, %v130_v41 }
  0xbb   :  { %v144_v47 = vadd.f32 %v143_v44, %v142_v42 }
  0xbd   :  { %v146_v48 = vsub.f32 %v144_v47, %v132_v46 }
  0xbf   :  { %v148_v50 = vmul.f32 0.125, %v146_v48 }
  0xc1   :  { %v150_v52 = vmul.f32 %v148_v50, %v148_v50 }
  0xc3   :  { %v154_v53 = vsel %vm153_vm0, %v150_v52, %v149_v51 }
  0xc4   :  { %v157_v54 = vsel %vm156_vm1, %v154_v53, 0.0 }
  0xc5   :  { %158 = vadd.xlane.f32.xlu0 %v157_v54 }
 0x138   :  { %v159_v55 = vpop.xlane.xlu0 %158 }
 0x139   :  { %244 = vrsqrt.f32 %v159_v55  ;;  %vm167_vm2 = vcmp.eq.f32.partialorder %v159_v55, inf  ;;  %v170_v63 = vand.u32 2147483648, %v159_v55  ;;  %vm169_vm3 = vcmp.eq.f32.partialorder %v159_v55, 0.0 }
 0x13f   :  { %v245_v56 = vpop.eup %244 }
 0x140   :  { %v161_v57 = vmul.f32 %v245_v56, %v159_v55 }
 0x142   :  { %v162_v58 = vmul.f32 %v245_v56, %v161_v57 }
 0x144   :  { %v163_v59 = vmul.f32 0.5, %v162_v58 }
 0x146   :  { %v164_v60 = vsub.f32 1.5, %v163_v59 }
 0x148   :  { %v165_v61 = vmul.f32 %v245_v56, %v164_v60 }
 0x14a   :  { %v166_v62 = vmul.f32 %v165_v61, %v159_v55 }
 0x14c   :  { %v168_v0 = vsel %vm167_vm2, %v159_v55, %v166_v62 }
 0x14d   :  { %v171_v1 = vsel %vm169_vm3, %v170_v63, %v168_v0 }
 0x14e   :  { %172 = vst [vmem:[%s305_s3] sm:$0x3] %v171_v1 }

</bundles_post_ra>
